<compile_context>
chip_gen: v7x
topology: tpu7x:2x2x1
jax: 0.10.0
libtpu: 0.0.40
codegen_flags: <defaults>
</compile_context>

<pallas_src>
import jax
import jax.numpy as jnp
from jax.experimental import pallas as pl
from jax.experimental.pallas import tpu as pltpu


_MAX_LANE = 1024        # lane-dense last dim (multiple of 128)
_MAX_TILE_ROWS = 512    # 512 * 1024 * 4 B = 2 MiB per f32 block


def _round_up(x, m):
    return -(-x // m) * m


def _temporal_filter_kernel(alpha_ref, xprev_ref, xc_ref, o_ref):
    # alpha_ref holds a single sigmoid(alpha) scalar in SMEM.
    a = alpha_ref[0]
    xp = xprev_ref[...].astype(jnp.float32)
    xc = xc_ref[...].astype(jnp.float32)
    o_ref[...] = (xp * (1.0 - a) + a * xc).astype(o_ref.dtype)


def temporally_filter(xc, x_prev, alpha):
    """Pallas implementation of TemporallyFilter.forward.

    xf = (1 - sigmoid(alpha)) * x_prev + sigmoid(alpha) * xc

    Returns xf; the caller carries xf forward as the next step's x_prev.
    """
    orig_shape = xc.shape
    dtype = xc.dtype
    # x_prev is a broadcastable buffer (starts as zeros(1) in the module).
    x_prev = jnp.broadcast_to(x_prev, orig_shape).astype(dtype)

    # Scalar mixing coefficient: one sigmoid on a length-1 parameter, done in
    # the wrapper (negligible) so the kernel hot path is a pure VPU blend.
    alpha_s = jax.nn.sigmoid(jnp.asarray(alpha, jnp.float32).reshape(-1)[:1])

    # ---- lane-dense layout: flatten to a (rows, lane) slab ------------------
    n = int(xc.size)
    lane = _MAX_LANE
    while lane > 128 and n < lane:      # shrink for tiny inputs (stays x128)
        lane //= 2
    rows = -(-n // lane)

    if rows <= 8:
        tile_rows = rows                # single full-extent block (tiny input)
    else:
        # Multiple of 8, capped for VMEM, and >= 2 grid steps so the
        # "parallel" grid axis has something to shard across v7x cores.
        tile_rows = min(_MAX_TILE_ROWS, _round_up(-(-rows // 2), 8))
    padded_rows = _round_up(rows, tile_rows)
    grid = (padded_rows // tile_rows,)

    def to_slab(arr):
        flat = arr.reshape(-1)
        pad = padded_rows * lane - n
        if pad:
            flat = jnp.pad(flat, (0, pad))
        return flat.reshape(padded_rows, lane)

    xprev_slab = to_slab(x_prev)
    xc_slab = to_slab(xc)

    tile_spec = pl.BlockSpec((tile_rows, lane), lambda i: (i, 0))
    alpha_spec = pl.BlockSpec(memory_space=pltpu.MemorySpace.SMEM)

    out_slab = pl.pallas_call(
        _temporal_filter_kernel,
        out_shape=jax.ShapeDtypeStruct((padded_rows, lane), dtype),
        grid=grid,
        in_specs=[alpha_spec, tile_spec, tile_spec],
        out_specs=tile_spec,
        # x_prev is overwritten by xf in the module; let XLA reuse its buffer.
        input_output_aliases={1: 0},
        compiler_params=pltpu.CompilerParams(
            dimension_semantics=("parallel",),
            vmem_limit_bytes=32 * 1024 * 1024,
        ),
    )(alpha_s, xprev_slab, xc_slab)

    return out_slab.reshape(-1)[:n].reshape(orig_shape)


def _reference(xc, x_prev, alpha):
    a = jax.nn.sigmoid(alpha.astype(jnp.float32))
    return jnp.broadcast_to(x_prev, xc.shape) * (1.0 - a) + a * xc


if __name__ == "__main__":
    k1, k2 = jax.random.split(jax.random.PRNGKey(0))
    batch, xc_dim = 4, 32                          # small [batch, xc_dimension]
    xc1 = jax.random.normal(k1, (batch, xc_dim), dtype=jnp.float32)
    xc2 = jax.random.normal(k2, (batch, xc_dim), dtype=jnp.float32)
    alpha = jnp.ones((1,), dtype=jnp.float32)      # nn.Parameter(torch.ones(1))
    x_prev0 = jnp.zeros((1,), dtype=jnp.float32)   # register_buffer zeros(1)

    # step 1
    xf1 = jax.block_until_ready(temporally_filter(xc1, x_prev0, alpha))
    ref1 = _reference(xc1, x_prev0, alpha)
    assert xf1.shape == (batch, xc_dim)
    assert jnp.allclose(xf1, ref1, atol=1e-6, rtol=1e-6)

    # step 2: recurrent state update x_prev <- xf (carried functionally)
    xf2 = jax.block_until_ready(temporally_filter(xc2, xf1, alpha))
    ref2 = _reference(xc2, ref1, alpha)
    assert jnp.allclose(xf2, ref2, atol=1e-5, rtol=1e-5)

    print("KERNEL_OK")
</pallas_src>

<mosaic_0001>
module attributes {stable_mosaic.version = 11 : i64} {
  func.func @_temporal_filter_kernel(%arg0: i32, %arg1: memref<1xf32, #tpu.memory_space<smem>>, %arg2: memref<1x128xf32, #tpu.memory_space<vmem>>, %arg3: memref<1x128xf32, #tpu.memory_space<vmem>>, %arg4: memref<1x128xf32, #tpu.memory_space<vmem>>) attributes {dimension_semantics = [#tpu.dimension_semantics<parallel>], iteration_bounds = array<i64: 1>, scalar_prefetch = 0 : i64, scratch_operands = 0 : i64, tpu.core_type = #tpu.core_type<tc>, window_params = [{transform_indices = @transform_0, window_bounds = array<i64: 1>}, {transform_indices = @transform_1, window_bounds = array<i64: 1, 128>}, {transform_indices = @transform_2, window_bounds = array<i64: 1, 128>}, {transform_indices = @transform_3, window_bounds = array<i64: 1, 128>}]} {
    %c0 = arith.constant 0 : index
    %0 = memref.load %arg1[%c0] : memref<1xf32, #tpu.memory_space<smem>>
    %c0_0 = arith.constant 0 : index
    %c0_1 = arith.constant 0 : index
    %1 = vector.load %arg2[%c0_0, %c0_1] : memref<1x128xf32, #tpu.memory_space<vmem>>, vector<1x128xf32>
    %c0_2 = arith.constant 0 : index
    %c0_3 = arith.constant 0 : index
    %2 = vector.load %arg3[%c0_2, %c0_3] : memref<1x128xf32, #tpu.memory_space<vmem>>, vector<1x128xf32>
    %cst = arith.constant 1.000000e+00 : f32
    %3 = arith.subf %cst, %0 : f32
    %4 = vector.broadcast %3 : f32 to vector<1x128xf32>
    %5 = arith.mulf %1, %4 : vector<1x128xf32>
    %6 = vector.broadcast %0 : f32 to vector<1x128xf32>
    %7 = arith.mulf %6, %2 : vector<1x128xf32>
    %8 = arith.addf %5, %7 : vector<1x128xf32>
    %c0_4 = arith.constant 0 : index
    %c0_5 = arith.constant 0 : index
    %9 = vector.load %arg4[%c0_4, %c0_5] : memref<1x128xf32, #tpu.memory_space<vmem>>, vector<1x128xf32>
    tpu.vector_store %arg4[%c0_4, %c0_5], %8 {strides = array<i32>} : memref<1x128xf32, #tpu.memory_space<vmem>>, vector<1x128xf32>,
    return
  }
  func.func @transform_0(%arg0: i32) -> i32 {
    %c0_i32 = arith.constant 0 : i32
    %c0_i32_0 = arith.constant 0 : i32
    return %c0_i32 : i32
  }
  func.func @transform_1(%arg0: i32) -> (i32, i32) {
    %c0_i32 = arith.constant 0 : i32
    %c0_i32_0 = arith.constant 0 : i32
    return %arg0, %c0_i32 : i32, i32
  }
  func.func @transform_2(%arg0: i32) -> (i32, i32) {
    %c0_i32 = arith.constant 0 : i32
    %c0_i32_0 = arith.constant 0 : i32
    return %arg0, %c0_i32 : i32, i32
  }
  func.func @transform_3(%arg0: i32) -> (i32, i32) {
    %c0_i32 = arith.constant 0 : i32
    %c0_i32_0 = arith.constant 0 : i32
    return %arg0, %c0_i32 : i32, i32
  }
}

</mosaic_0001>

<bundles_post_ra>
// kernel: tpu_custom_call.1
= control target key start
LH: loop header
LB: loop body
LE: loop exit
PB: predicated region body
PF: predicated region fallthrough
CT: control target
= control target key end

     0   :  { %9 = vsyncpa [#allocation4], 0  ;;  %s158_s0 = inlined_call_operand.<no memory space> [shape: f32[1], index: 0, kind: input, shape index: {}]   ;;  %s159_s1 = inlined_call_operand.hbm [shape: f32[1,128], index: 1, kind: input, shape index: {}, may-alias: {1,3}]   ;;  %s160_s2 = inlined_call_operand.vmem [shape: f32[1,128], index: 2, kind: input, shape index: {}]   ;;  %s161_s3 = inlined_call_operand.hbm [shape: f32[1,128], index: 3, kind: output, shape index: {}, may-alias: {1,3}]  }
   0x1   :  { %10 = vsyncpa [#allocation5], 0  ;;  %s103_s12 = smov [#allocation3]   ;;  %s55_s16 = scalar_lea.hbm %s159_s1, 16 }
   0x2   :  { %s19_s13 = sshll.u32 %s103_s12, 4  ;;  %p56_p0 = scmp.ne.s32.totalorder %s159_s1, %s55_s16  ;;  %s20_s13 = int_to_ptr.vmem [resolvable:$true] %s19_s13 }
   0x3   :  { %p59_p1 = scmp.lt.u32.totalorder %s55_s16, %s159_s1 }
   0x5   :  { %p61_p2 = pnand %p59_p1, %p56_p0 }
   0x7   :  { %64 = shalt.err (!%p61_p2)
}
   0x8   :  { %s65_s21 = scalar_lea.vmem %s20_s13, 16  ;;  %s69_s22 = scalar_lea.vmem %s20_s13, 32 }
   0x9   :  { %p66_p3 = scmp.ne.s32.totalorder %s20_s13, %s65_s21  ;;  %p70_p4 = scmp.lt.s32.totalorder %s20_s13, %s20_s13 }
   0xa   :  { %p71_p5 = scmp.lt.s32.totalorder %s69_s22, %s65_s21 }
   0xc   :  { %p72_p6 = por %p71_p5, %p70_p4 }
   0xe   :  { %p73_p7 = pnand %p72_p6, %p66_p3 }
  0x10   :  { %76 = shalt.err (!%p73_p7)
}
  0x11   :  { %22 = dma.hbm_to_vmem [thread:$0]  %s159_s1, 16, %s20_s13, [#allocation4]  }
  0x12   :  { %99 = dma.done.wait [#allocation4], 16  }
  0x13   :  { %100 = vsyncadd [#allocation4], 4294967280  ;;  %s31_s27 = ssub.f32 1.0, %s158_s0  ;;  %v34_v1 = vstv %s158_s0  ;;  %v29_v2 = vld [vmem:[#allocation3] sm:$0x1]  ;;  %s104_s5 = smov [#allocation6]  }
  0x14   :  { %v30_v3 = vld [vmem:[%s160_s2] sm:$0x1]  ;;  %s44_s6 = sshll.u32 %s104_s5, 4  ;;  %s45_s6 = int_to_ptr.vmem [resolvable:$true] %s44_s6 }
  0x15   :  { %v32_v0 = vstv %s31_s27  ;;  %v35_v5 = vmul.f32 %v34_v1, %v30_v3  ;;  %s77_s1 = scalar_lea.vmem %s45_s6, 16  ;;  %s81_s7 = scalar_lea.vmem %s45_s6, 32 }
  0x16   :  { %v33_v4 = vmul.f32 %v32_v0, %v29_v2  ;;  %p78_p8 = scmp.ne.s32.totalorder %s45_s6, %s77_s1  ;;  %p82_p9 = scmp.lt.s32.totalorder %s45_s6, %s45_s6 }
  0x17   :  { %p83_p10 = scmp.lt.s32.totalorder %s81_s7, %s77_s1 }
  0x18   :  { %v36_v6 = vadd.f32 %v35_v5, %v33_v4 }
  0x19   :  { %p84_p11 = por %p83_p10, %p82_p9 }
  0x1a   :  { %37 = vst [vmem:[#allocation6] sm:$0x1] %v36_v6 }
  0x1b   :  { %p85_p12 = pnand %p84_p11, %p78_p8 }
  0x1d   :  { %88 = shalt.err (!%p85_p12)
}
  0x1e   :  { %s89_s9 = scalar_lea.hbm %s161_s3, 16 }
  0x1f   :  { %p90_p13 = scmp.ne.s32.totalorder %s161_s3, %s89_s9  ;;  %p93_p0 = scmp.lt.u32.totalorder %s89_s9, %s161_s3 }
  0x21   :  { %p95_p1 = pnand %p93_p0, %p90_p13 }
  0x23   :  { %98 = shalt.err (!%p95_p1)
}
  0x24   :  { %47 = dma.vmem_to_hbm [thread:$0]  %s45_s6, 16, %s161_s3, [#allocation5]  }
  0x25   :  { %101 = dma.done.wait [#allocation5], 16  }
  0x26   :  { %102 = vsyncadd [#allocation5], 4294967280 }
  0x27   :  { %51 = vsyncpa [#allocation4], 1 }
  0x28   :  { %52 = vsyncpa [#allocation5], 1 }

</bundles_post_ra>
